<compile_context>
chip_gen: v7x
topology: tpu7x:2x2x1
jax: 0.10.0
libtpu: 0.0.40
codegen_flags: <defaults>
</compile_context>

<pallas_src>
import functools

import jax
import jax.numpy as jnp
from jax.experimental import pallas as pl
from jax.experimental.pallas import tpu as pltpu


def _ce2d_kernel(x_ref, t_ref, o_ref, *, hw_valid, j_inner, ragged):
    """One grid step: (1, C, t_hw) logits block + (1, 1, t_hw) targets block.

    Accumulates per-pixel NLL into the resident (1, 1, t_hw) output block
    (output block index is constant along the innermost 'arbitrary' axis).
    """
    jo = pl.program_id(1)
    ji = pl.program_id(2)

    @pl.when(ji == 0)
    def _():
        o_ref[...] = jnp.zeros_like(o_ref)

    x_raw = x_ref[0]                     # (C, t_hw)  classes on sublanes, input dtype
    t = t_ref[0]                         # (1, t_hw)  int32 targets
    t_hw = x_raw.shape[-1]

    # Class-axis max and the target-logit gather in the INPUT dtype:
    # max and one-hot select are exact in bf16, and doing them at native width
    # cuts full-size f32 VALU work (v7x / bf16-on-v6e are VALU/EUP-bound).
    m_raw = jnp.max(x_raw, axis=0, keepdims=True)                        # (1, t_hw)
    class_ids = jax.lax.broadcasted_iota(jnp.int32, x_raw.shape, 0)      # (C, t_hw)
    xt_raw = jnp.sum(jnp.where(class_ids == t, x_raw, 0.0),
                     axis=0, keepdims=True)                              # (1, t_hw)

    m = m_raw.astype(jnp.float32)
    xt = xt_raw.astype(jnp.float32)

    # Only the numerically sensitive exp path runs in f32.
    e = jnp.exp(x_raw.astype(jnp.float32) - m)                           # (C, t_hw)
    lse = m + jnp.log(jnp.sum(e, axis=0, keepdims=True))                 # (1, t_hw)
    nll = lse - xt                                                       # (1, t_hw)

    if ragged:
        b = jo * j_inner + ji                       # flat pixel-tile index
        is_tail = (b + 1) * t_hw > hw_valid         # only the last tile is partial

        # Tail tile: mask out the undefined lanes of the partial DMA read
        # (select, not arithmetic, so NaN/garbage in invalid lanes cannot leak).
        @pl.when(is_tail)
        def _():
            pix = b * t_hw + jax.lax.broadcasted_iota(jnp.int32, nll.shape, 1)
            o_ref[...] += jnp.where(pix < hw_valid, nll, 0.0)[None]

        @pl.when(jnp.logical_not(is_tail))
        def _():
            o_ref[...] += nll[None]
    else:
        o_ref[...] += nll[None]


def _pick_vmem_limit():
    # Leave headroom below physical VMEM: ~48 MiB on v7x (64 MiB phys),
    # 96 MiB on v5e/v6e (128 MiB phys). Conservative fallback if query fails.
    phys = 64 << 20
    try:
        phys = int(getattr(pltpu.get_tpu_info(), "vmem_capacity_bytes", phys))
    except Exception:
        pass
    return int(min(96 << 20, (phys * 3) // 4))


def cross_entropy_loss_2d(inputs, targets, *, max_lanes=8192, vmem_limit_bytes=None):
    """inputs: (N, C, H, W) float logits; targets: (N, H, W) int. Returns scalar mean NLL."""
    N, C, H, W = inputs.shape
    HW = H * W
    itemsize = jnp.dtype(inputs.dtype).itemsize
    assert max_lanes >= 128

    if vmem_limit_bytes is None:
        vmem_limit_bytes = _pick_vmem_limit()

    # Lane-axis tile: multiple of 128, as large as the VMEM budget allows.
    # Per-lane working set ≈ double-buffered logits (2*itemsize*C) + the f32
    # cast copy and exp temporary (≈ 2*4*C) + targets/output/nll blocks.
    budget = vmem_limit_bytes // 2                     # slack for compiler scratch
    per_lane_bytes = C * (2 * itemsize + 8) + 32
    max_t = max(1, budget // per_lane_bytes)
    t_hw = max(128, (max_t // 128) * 128)
    t_hw = min(t_hw, max_lanes)
    if t_hw >= HW:
        t_hw = HW                                      # single full-extent block, no mask

    J = pl.cdiv(HW, t_hw)                              # number of pixel tiles
    # Split the pixel-tile axis into an outer "parallel" chunk so both v7x
    # TensorCores stay busy even at N == 1. Only exact splits are used so no
    # out-of-range block indices are ever generated; prime J > 5 falls back to
    # a single chunk (N-axis parallelism still applies).
    j_outer = 1
    for cand in (2, 3, 4, 5):
        if J >= cand and J % cand == 0:
            j_outer = cand
            break
    j_inner = J // j_outer

    ragged = (HW % t_hw) != 0

    # Pure (free) reshapes of the native NCHW layout -- no pad / transpose pass in HBM.
    x3 = inputs.reshape(N, C, HW)
    t3 = targets.reshape(N, 1, HW).astype(jnp.int32)

    kernel = functools.partial(_ce2d_kernel, hw_valid=HW, j_inner=j_inner, ragged=ragged)

    partial_sums = pl.pallas_call(
        kernel,
        out_shape=jax.ShapeDtypeStruct((N * j_outer, 1, t_hw), jnp.float32),
        grid_spec=pltpu.PrefetchScalarGridSpec(
            num_scalar_prefetch=0,
            grid=(N, j_outer, j_inner),
            in_specs=[
                pl.BlockSpec((1, C, t_hw), lambda n, jo, ji: (n, 0, jo * j_inner + ji)),
                pl.BlockSpec((1, 1, t_hw), lambda n, jo, ji: (n, 0, jo * j_inner + ji)),
            ],
            out_specs=pl.BlockSpec((1, 1, t_hw),
                                   lambda n, jo, ji: (n * j_outer + jo, 0, 0)),
        ),
        compiler_params=pltpu.CompilerParams(
            dimension_semantics=("parallel", "parallel", "arbitrary"),
            vmem_limit_bytes=int(vmem_limit_bytes),
        ),
        cost_estimate=pl.CostEstimate(
            flops=6 * N * HW * C,
            transcendentals=N * HW * C,
            bytes_accessed=N * C * HW * itemsize + N * HW * 4 + N * j_outer * t_hw * 4,
        ),
    )(x3, t3)

    # Final cross-lane / cross-batch reduce + mean in plain JAX (tiny array).
    return jnp.sum(partial_sums) / jnp.float32(N * HW)


if __name__ == "__main__":
    key = jax.random.PRNGKey(0)
    k_x, k_t = jax.random.split(key)

    def ref_loss(x, t):
        logp = jax.nn.log_softmax(x.astype(jnp.float32), axis=1)
        return -jnp.mean(jnp.take_along_axis(logp, t[:, None, :, :], axis=1))

    # 1) Base shapes implied by the module: N=2, C=4, 16x16 maps, f32.
    N, C, H, W = 2, 4, 16, 16
    x = jax.random.normal(k_x, (N, C, H, W), dtype=jnp.float32)
    t = jax.random.randint(k_t, (N, H, W), 0, C, dtype=jnp.int32)
    loss = jax.block_until_ready(cross_entropy_loss_2d(x, t))
    assert jnp.allclose(loss, ref_loss(x, t), atol=1e-5, rtol=1e-5), (loss, ref_loss(x, t))

    # 2) Ragged H*W with small forced tiles: exercises the unpadded partial last
    #    block, the pl.when-gated validity mask, and the parallel pixel split.
    x2 = jax.random.normal(k_x, (1, C, 13, 11), dtype=jnp.float32)
    t2 = jax.random.randint(k_t, (1, 13, 11), 0, C, dtype=jnp.int32)
    loss2 = jax.block_until_ready(cross_entropy_loss_2d(x2, t2, max_lanes=128))
    assert jnp.allclose(loss2, ref_loss(x2, t2), atol=1e-5, rtol=1e-5), (loss2, ref_loss(x2, t2))

    # 3) Multi-tile accumulation along the inner 'arbitrary' axis (J=4 -> 2x2 split).
    x3_ = jax.random.normal(k_x, (1, C, 16, 32), dtype=jnp.float32)
    t3_ = jax.random.randint(k_t, (1, 16, 32), 0, C, dtype=jnp.int32)
    loss3 = jax.block_until_ready(cross_entropy_loss_2d(x3_, t3_, max_lanes=128))
    assert jnp.allclose(loss3, ref_loss(x3_, t3_), atol=1e-5, rtol=1e-5), (loss3, ref_loss(x3_, t3_))

    # 4) bf16 logits: mixed-precision path (max/gather in bf16, exp path in f32).
    x4 = x.astype(jnp.bfloat16)
    loss4 = jax.block_until_ready(cross_entropy_loss_2d(x4, t))
    assert jnp.allclose(loss4, ref_loss(x4, t), atol=1e-4, rtol=1e-4), (loss4, ref_loss(x4, t))

    print("KERNEL_OK")
</pallas_src>

<mosaic_0001>
module attributes {stable_mosaic.version = 11 : i64} {
  func.func @_ce2d_kernel(%arg0: i32, %arg1: i32, %arg2: i32, %arg3: memref<1x4x256xf32, #tpu.memory_space<vmem>>, %arg4: memref<1x1x256xi32, #tpu.memory_space<vmem>>, %arg5: memref<1x1x256xf32, #tpu.memory_space<vmem>>) attributes {dimension_semantics = [#tpu.dimension_semantics<parallel>, #tpu.dimension_semantics<parallel>, #tpu.dimension_semantics<arbitrary>], iteration_bounds = array<i64: 2, 1, 1>, scalar_prefetch = 0 : i64, scratch_operands = 0 : i64, tpu.core_type = #tpu.core_type<tc>, window_params = [{transform_indices = @transform_0, window_bounds = array<i64: 1, 4, 256>}, {transform_indices = @transform_1, window_bounds = array<i64: 1, 1, 256>}, {transform_indices = @transform_2, window_bounds = array<i64: 1, 1, 256>}]} {
    %c0_i32 = arith.constant 0 : i32
    %0 = arith.cmpi eq, %arg2, %c0_i32 : i32
    %1 = arith.extui %0 : i1 to i32
    %c0_i32_0 = arith.constant 0 : i32
    %2 = arith.cmpi ne, %1, %c0_i32_0 : i32
    scf.if %2 {
      %cst_15 = arith.constant 0.000000e+00 : f32
      %28 = vector.broadcast %cst_15 : f32 to vector<1x1x256xf32>
      %c0_16 = arith.constant 0 : index
      %c0_17 = arith.constant 0 : index
      %c0_18 = arith.constant 0 : index
      %29 = vector.load %arg5[%c0_16, %c0_17, %c0_18] : memref<1x1x256xf32, #tpu.memory_space<vmem>>, vector<1x1x256xf32>
      tpu.vector_store %arg5[%c0_16, %c0_17, %c0_18], %28 {strides = array<i32>} : memref<1x1x256xf32, #tpu.memory_space<vmem>>, vector<1x1x256xf32>,
    } else {
    }
    %c0 = arith.constant 0 : index
    %c0_1 = arith.constant 0 : index
    %c0_2 = arith.constant 0 : index
    %3 = vector.load %arg3[%c0, %c0_1, %c0_2] : memref<1x4x256xf32, #tpu.memory_space<vmem>>, vector<1x4x256xf32>
    %4 = vector.shape_cast %3 : vector<1x4x256xf32> to vector<4x256xf32>
    %c0_3 = arith.constant 0 : index
    %c0_4 = arith.constant 0 : index
    %c0_5 = arith.constant 0 : index
    %5 = vector.load %arg4[%c0_3, %c0_4, %c0_5] : memref<1x1x256xi32, #tpu.memory_space<vmem>>, vector<1x1x256xi32>
    %6 = vector.shape_cast %5 : vector<1x1x256xi32> to vector<1x256xi32>
    %cst = arith.constant dense<0xFF800000> : vector<256xf32>
    %7 = vector.multi_reduction <maximumf>, %4, %cst [0] : vector<4x256xf32> to vector<256xf32>
    %8 = vector.shape_cast %7 : vector<256xf32> to vector<1x256xf32>
    %9 = tpu.iota {dimensions = array<i32: 0>} : vector<4x256xi32>
    %10 = vector.broadcast %6 : vector<1x256xi32> to vector<4x256xi32>
    %11 = arith.cmpi eq, %9, %10 : vector<4x256xi32>
    %cst_6 = arith.constant 0.000000e+00 : f32
    %12 = vector.broadcast %cst_6 : f32 to vector<4x256xf32>
    %13 = arith.select %11, %4, %12 : vector<4x256xi1>, vector<4x256xf32>
    %cst_7 = arith.constant dense<0.000000e+00> : vector<256xf32>
    %14 = vector.multi_reduction <add>, %13, %cst_7 [0] : vector<4x256xf32> to vector<256xf32>
    %15 = vector.shape_cast %14 : vector<256xf32> to vector<1x256xf32>
    %16 = vector.broadcast %8 : vector<1x256xf32> to vector<4x256xf32>
    %17 = arith.subf %4, %16 : vector<4x256xf32>
    %18 = math.exp %17 : vector<4x256xf32>
    %cst_8 = arith.constant dense<0.000000e+00> : vector<256xf32>
    %19 = vector.multi_reduction <add>, %18, %cst_8 [0] : vector<4x256xf32> to vector<256xf32>
    %20 = vector.shape_cast %19 : vector<256xf32> to vector<1x256xf32>
    %21 = math.log %20 : vector<1x256xf32>
    %22 = arith.addf %8, %21 : vector<1x256xf32>
    %23 = arith.subf %22, %15 : vector<1x256xf32>
    %c0_9 = arith.constant 0 : index
    %c0_10 = arith.constant 0 : index
    %c0_11 = arith.constant 0 : index
    %24 = vector.load %arg5[%c0_9, %c0_10, %c0_11] : memref<1x1x256xf32, #tpu.memory_space<vmem>>, vector<1x1x256xf32>
    %25 = vector.shape_cast %23 : vector<1x256xf32> to vector<1x1x256xf32>
    %26 = arith.addf %24, %25 : vector<1x1x256xf32>
    %c0_12 = arith.constant 0 : index
    %c0_13 = arith.constant 0 : index
    %c0_14 = arith.constant 0 : index
    %27 = vector.load %arg5[%c0_12, %c0_13, %c0_14] : memref<1x1x256xf32, #tpu.memory_space<vmem>>, vector<1x1x256xf32>
    tpu.vector_store %arg5[%c0_12, %c0_13, %c0_14], %26 {strides = array<i32>} : memref<1x1x256xf32, #tpu.memory_space<vmem>>, vector<1x1x256xf32>,
    return
  }
  func.func @transform_0(%arg0: i32, %arg1: i32, %arg2: i32) -> (i32, i32, i32) {
    %c1_i32 = arith.constant 1 : i32
    %0 = arith.muli %arg1, %c1_i32 : i32
    %1 = arith.addi %0, %arg2 : i32
    %c0_i32 = arith.constant 0 : i32
    %c0_i32_0 = arith.constant 0 : i32
    return %arg0, %c0_i32, %1 : i32, i32, i32
  }
  func.func @transform_1(%arg0: i32, %arg1: i32, %arg2: i32) -> (i32, i32, i32) {
    %c1_i32 = arith.constant 1 : i32
    %0 = arith.muli %arg1, %c1_i32 : i32
    %1 = arith.addi %0, %arg2 : i32
    %c0_i32 = arith.constant 0 : i32
    %c0_i32_0 = arith.constant 0 : i32
    return %arg0, %c0_i32, %1 : i32, i32, i32
  }
  func.func @transform_2(%arg0: i32, %arg1: i32, %arg2: i32) -> (i32, i32, i32) {
    %c1_i32 = arith.constant 1 : i32
    %0 = arith.muli %arg0, %c1_i32 : i32
    %1 = arith.addi %0, %arg1 : i32
    %c0_i32 = arith.constant 0 : i32
    %c0_i32_0 = arith.constant 0 : i32
    %c0_i32_1 = arith.constant 0 : i32
    return %1, %c0_i32, %c0_i32_0 : i32, i32, i32
  }
}

</mosaic_0001>

<bundles_post_ra>
// kernel: tpu_custom_call.1
= control target key start
LH: loop header
LB: loop body
LE: loop exit
PB: predicated region body
PF: predicated region fallthrough
CT: control target
= control target key end

     0   :  { %7 = vsyncpa [#allocation3], 0  ;;  %s982_s0 = inlined_call_operand.hbm [shape: f32[2,4,256], index: 0, kind: input, shape index: {}]   ;;  %s983_s1 = inlined_call_operand.hbm [shape: s32[2,1,256], index: 1, kind: input, shape index: {}]   ;;  %s984_s2 = inlined_call_operand.hbm [shape: f32[2,1,256], index: 2, kind: output, shape index: {}]  }
   0x1   :  { %9 = vsyncpa [#allocation3 + $0x1], 0 }
   0x2   :  { %10 = vsyncpa [#allocation6], 0 }
   0x3   :  { %12 = vsyncpa [#allocation6 + $0x1], 0 }
   0x4   :  { %13 = vsyncpa [#allocation4], 0 }
   0x5   :  { %15 = vsyncpa [#allocation4 + $0x1], 0  ;;  %s747_s9 = smov 0   ;;  %s749_s10 = smov 0  }
   0x6   :  { %s751_s11 = smov 0   ;;  %s753_s12 = smov 0  }
   0x7   :  { %s755_s13 = smov 0   ;;  %s757_s14 = smov 0  }
   0x8 LB: > { %s481_s15 = sadd.s32 4294967295, %s725_s14   ;;  %s482_s16 = sadd.s32 4294967294, %s725_s14   ;;  %s725_s14 = sphi %s757_s14, %s21_s14   ;;  %s721_s13 = sphi %s755_s13, %s1006_s13   ;;  %s717_s12 = sphi %s753_s12, %s1005_s12   ;;  %s713_s11 = sphi %s751_s11, %s1004_s11   ;;  %s709_s10 = sphi %s749_s10, %s1003_s10   ;;  %s705_s9 = sphi %s747_s9, %s1002_s9  }
   0x9   : > { %s40_s17 = sadd.s32 1, %s721_s13  ;;  %s51_s18 = sadd.s32 1, %s713_s11 }
   0xa   : > { %p42_p0 = scmp.ge.s32.totalorder %s40_s17, 2  ;;  %p58_p1 = scmp.ne.s32.totalorder %s713_s11, %s709_s10 }
   0xb   : > { %p59_p2 = scmp.eq.s32.totalorder %s725_s14, 0  ;;  %p64_p3 = scmp.ne.s32.totalorder %s709_s10, %s705_s9 }
   0xc   : > { %s1008_s17 = smov (%p42_p0, %s40_s17), 0  ;;  %p65_p5 = scmp.eq.s32.totalorder %s481_s15, 0 }
   0xd   : > { %p788_p4 = por %p59_p2, %p58_p1  ;;  %s46_s20 = ssub.s32 %s721_s13, %s1008_s17 }
   0xe   : > { %p120_p6 = scmp.eq.s32.totalorder %s481_s15, 1  ;;  %p49_p7 = scmp.eq.s32.totalorder %s46_s20, 0 }
   0xf   : > { %p794_p8 = por %p65_p5, %p64_p3  ;;  %p126_p10 = scmp.eq.s32.totalorder %s482_s16, 1 }
  0x10   : > { %p798_p9 = por %p120_p6, %p58_p1  ;;  %p520_p13 = scmp.lt.s32.totalorder %s725_s14, 2 }
  0x11   : > { %s988_s21 = scalar_select %p794_p8, 1, 0 }
  0x12   : > { %s989_s22 = scalar_select %p798_p9, 1, 0 }
  0x13   : > { %s803_s23 = scalar_select %p49_p7, %s713_s11, %s51_s18  }
  0x14   : > { %p805_p11 = por %p126_p10, %p64_p3  ;;  %s812_s25 = sand.u32 1, %s713_s11  }
  0x15   : > { %s485_s26 = sshll.u32 %s812_s25, 3  ;;  %s500_s27 = sshll.u32 %s721_s13, 7 }
  0x16   : > { %s990_s24 = scalar_select %p805_p11, 1, 0 }
  0x17   : > { %s819_s30 = scalar_lea.hbm %s982_s0, %s500_s27  ;;  %s150_s3 = scalar_lea.vmem [#allocation2], %s485_s26 }
  0x18   : > { %s161_s4 = sshll.u32 %s150_s3, 4  ;;  %p825_p0 = pnand %p520_p13, %p788_p4  ;;  %s821_s4 = int_to_ptr.vmem [resolvable:$true] %s161_s4 }
  0x19   : > { %s147_s6 = scalar_lea.sflag [#allocation3], %s812_s25  ;;  %s579_s7 = scalar_lea.hbm %s819_s30, 128 }
  0x1a   : > { %p580_p3 = scmp.ne.s32.totalorder %s819_s30, %s579_s7  ;;  %p581_p5 = pneg %p825_p0 }
  0x1b   : > { %s584_s16 = scalar_lea.hbm %s982_s0, 256  ;;  %p585_p4 = scmp.lt.u32.totalorder %s819_s30, %s982_s0 }
  0x1c   : > { %p582_p6 = pnand %p581_p5, %p580_p3  ;;  %p586_p10 = scmp.lt.u32.totalorder %s584_s16, %s579_s7 }
  0x1d   : > { %p588_p12 = scmp.lt.u32.totalorder %s579_s7, %s819_s30 }
  0x1e   : > { %p583_p7 = pneg %p582_p6  ;;  %p587_p13 = por %p586_p10, %p585_p4 }
  0x20   : > { %p589_p1 = por %p588_p12, %p587_p13 }
  0x22   : > { %p590_p2 = pnand %p589_p1, %p583_p7 }
  0x24   : > { %593 = shalt.err (!%p590_p2)
}
  0x25   : > { %s594_s20 = scalar_lea.vmem %s821_s4, 128  ;;  %s727_s26 = smov [#allocation2]  }
  0x26   : > { %p595_p3 = scmp.ne.s32.totalorder %s821_s4, %s594_s20  ;;  %s599_s27 = sshll.u32 %s727_s26, 4  ;;  %s600_s27 = int_to_ptr.vmem [resolvable:$false] %s599_s27 }
  0x27   : > { %s601_s28 = scalar_lea.vmem %s600_s27, 256  ;;  %p602_p9 = scmp.lt.s32.totalorder %s821_s4, %s600_s27 }
  0x28   : > { %p597_p6 = pnand %p595_p3, %p581_p5  ;;  %p603_p4 = scmp.lt.s32.totalorder %s601_s28, %s594_s20 }
  0x2a   : > { %p598_p11 = pneg %p597_p6  ;;  %p604_p10 = por %p603_p4, %p602_p9 }
  0x2c   : > { %p605_p12 = pnand %p604_p10, %p598_p11 }
  0x2e   : > { %608 = shalt.err (!%p605_p12)
}
  0x2f   : > { %512 = dma.hbm_to_vmem [thread:$0]  (!%p825_p0), %s819_s30, 128, %s821_s4, %s147_s6  }
  0x30   : > { %p992_p1 = scmp.lt.s32.totalorder %s725_s14, 3  ;;  %p993_p2 = scmp.ge.s32.totalorder %s725_s14, 1 }
  0x31   : > { %s488_s3 = sshll.u32 %s812_s25, 1  ;;  %s501_s7 = sshll.u32 %s721_s13, 5 }
  0x32   : > { %p861_p7 = pnand %p993_p2, %p992_p1  ;;  %s870_s16 = scalar_lea.hbm %s983_s1, %s501_s7 }
  0x33   : > { %s172_s18 = scalar_lea.vmem [#allocation5], %s488_s3  ;;  %s169_s30 = scalar_lea.sflag [#allocation6], %s812_s25 }
  0x34   : > { %s994_s29 = scalar_select %p861_p7, 1, 0 }
  0x35   : > { %s183_s19 = sshll.u32 %s172_s18, 4  ;;  %s609_s4 = scalar_lea.hbm %s870_s16, 32  ;;  %s184_s19 = int_to_ptr.vmem [resolvable:$true] %s183_s19 }
  0x36   : > { %p610_p9 = scmp.ne.s32.totalorder %s870_s16, %s609_s4  ;;  %s614_s26 = scalar_lea.hbm %s983_s1, 64 }
  0x37   : > { %p615_p3 = scmp.lt.u32.totalorder %s870_s16, %s983_s1  ;;  %p616_p6 = scmp.lt.u32.totalorder %s614_s26, %s609_s4 }
  0x38   : > { %p612_p11 = pnand %p610_p9, %p581_p5  ;;  %p618_p10 = scmp.lt.u32.totalorder %s609_s4, %s870_s16 }
  0x39   : > { %p617_p4 = por %p616_p6, %p615_p3 }
  0x3a   : > { %p613_p13 = pneg %p612_p11 }
  0x3b   : > { %p619_p12 = por %p618_p10, %p617_p4 }
  0x3d   : > { %p620_p1 = pnand %p619_p12, %p613_p13 }
  0x3f   : > { %623 = shalt.err (!%p620_p1)
}
  0x40   : > { %s624_s25 = scalar_lea.vmem %s184_s19, 32  ;;  %s728_s3 = smov [#allocation5]  }
  0x41   : > { %p625_p2 = scmp.ne.s32.totalorder %s184_s19, %s624_s25  ;;  %s629_s7 = sshll.u32 %s728_s3, 4  ;;  %s630_s7 = int_to_ptr.vmem [resolvable:$false] %s629_s7 }
  0x42   : > { %s631_s8 = scalar_lea.vmem %s630_s7, 64  ;;  %p632_p8 = scmp.lt.s32.totalorder %s184_s19, %s630_s7 }
  0x43   : > { %p627_p9 = pnand %p625_p2, %p581_p5  ;;  %p633_p7 = scmp.lt.s32.totalorder %s631_s8, %s624_s25 }
  0x45   : > { %p628_p11 = pneg %p627_p9  ;;  %p634_p3 = por %p633_p7, %p632_p8 }
  0x47   : > { %p635_p6 = pnand %p634_p3, %p628_p11 }
  0x49   : > { %638 = shalt.err (!%p635_p6)
}
  0x4a   : > { %515 = dma.hbm_to_vmem [thread:$0]  (!%p825_p0), %s870_s16, 32, %s184_s19, %s169_s30  }
  0x4b   : > { %p995_p13 = scmp.ne.s32.totalorder %s994_s29, 0 }
  0x4c   : > { %s895_s15 = sand.u32 (!%p995_p13), 1, %s709_s10   ;;  %p996_p5 = scmp.ne.s32.totalorder (!%p995_p13), %s988_s21, 0 }
  0x4d   : > { %192 = sbr.rel (%p995_p13) target bundleno = 175 (0xaf), region = 28  ;;  %s492_s18 = sshll.u32 (!%p995_p13), %s895_s15, 3 }
  0x4e   : > { %s195_s4 = scalar_lea.sflag (!%p995_p13), [#allocation3], %s895_s15  ;;  %s198_s6 = scalar_lea.vmem (!%p995_p13), [#allocation2], %s492_s18 }
  0x54   : > { %692 = dma.done.wait (%p996_p5), %s195_s4, 128  }
  0x55   : > { %694 = vsyncadd (%p996_p5), %s195_s4, 4294967168  ;;  %s493_s5 = sshll.u32 %s895_s15, 1  ;;  %s204_s29 = scalar_lea.sflag [#allocation6], %s895_s15 }
  0x56   : > { %s207_s16 = scalar_lea.vmem [#allocation5], %s493_s5 }
  0x57   : > { %696 = dma.done.wait (%p996_p5), %s204_s29, 32  }
  0x58   : > { %698 = vsyncadd (%p996_p5), %s204_s29, 4294967264  ;;  %v242_v0 = vlaneseq  ;;  %s913_s19 = scalar_lea.vmem [#allocation7], %s493_s5  ;;  %v729_v2 = vmov 0.0   ;;  %vm252_vm1 = vcmask 1043456   ;;  %v247_v3 = vld [vmem:[%s198_s6] sm:$0xff]  ;;  %s502_s21 = sshll.u32 %s717_s12, 5 }
  0x59   : > { %v250_v4 = vcombine.high %v247_v3, %v247_v3  ;;  %v253_v5 = vsel %vm252_vm1, %v247_v3, -inf  ;;  %v248_v24 = vld [vmem:[%s207_s16] sm:$0x3]  ;;  %v730_v58 = vmov 1966171168   ;;  %s368_s30 = sshll.u32 %s913_s19, 4  ;;  %s930_s27 = scalar_lea.hbm %s984_s2, %s502_s21  ;;  %s932_s30 = int_to_ptr.vmem [resolvable:$true] %s368_s30 }
  0x5a   : > { %vm909_vm0 = vcmp.lt.s32.totalorder %v242_v0, 256  ;;  %v254_v6 = vrot.slane %v253_v5, 4  ;;  %v268_v19 = vshrl.u32 %v242_v0, 7  ;;  %v332_v59 = vunpack.c.l.s4 %v730_v58  ;;  %s353_s28 = scalar_lea.sflag [#allocation4], %s895_s15  ;;  %s639_s25 = scalar_lea.vmem %s932_s30, 32 }
  0x5b   : > { %246 = vst.msk [vmem:[%s913_s19] sm:$0x3] %vm909_vm0, %v729_v2  ;;  %v260_v7 = vsel %vm252_vm1, %v250_v4, -inf  ;;  %p640_p8 = scmp.ne.s32.totalorder %s932_s30, %s639_s25  ;;  %p999_p0 = scmp.ne.s32.totalorder %s989_s22, 0 }
  0x5c   : > { %v255_v8 = vmax.f32 %v253_v5, %v254_v6  ;;  %v261_v9 = vrot.slane %v260_v7, 4  ;;  %v271_v22 = vsub.s32 0, %v268_v19  ;;  %v275_v25 = vsub.s32 1, %v268_v19  ;;  %s731_s12 = smov [#allocation7]  }
  0x5d   : > { %p641_p7 = pnand %p640_p8, %p999_p0  ;;  %s643_s3 = sshll.u32 %s731_s12, 4  ;;  %s644_s3 = int_to_ptr.vmem [resolvable:$false] %s643_s3 }
  0x5e   : > { %v256_v10 = vrot.slane %v255_v8, 2  ;;  %v262_v11 = vmax.f32 %v260_v7, %v261_v9  ;;  %v272_v26 = vrot.slane %v248_v24, %v271_v22  ;;  %v276_v27 = vrot.slane %v248_v24, %v275_v25  ;;  %s645_s7 = scalar_lea.vmem %s644_s3, 64  ;;  %p646_p10 = scmp.lt.s32.totalorder %s932_s30, %s644_s3 }
  0x5f   : > { %p642_p4 = pneg %p641_p7  ;;  %p647_p12 = scmp.lt.s32.totalorder %s645_s7, %s639_s25 }
  0x60   : > { %v257_v12 = vmax.f32 %v255_v8, %v256_v10  ;;  %v263_v13 = vrot.slane %v262_v11, 2  ;;  %vm277_vm2 = vcmp.eq.s32.totalorder %v268_v19, %v272_v26  ;;  %vm278_vm3 = vcmp.eq.s32.totalorder %v268_v19, %v276_v27 }
  0x61   : > { %v279_v28 = vsel %vm277_vm2, %v247_v3, 0.0  ;;  %v280_v30 = vsel %vm278_vm3, %v250_v4, 0.0  ;;  %v333_v4 = vunpack.c.0.s8 %v332_v59  ;;  %p648_p1 = por %p647_p12, %p646_p10 }
  0x62   : > { %v258_v14 = vrot.slane %v257_v12, 1  ;;  %v264_v15 = vmax.f32 %v262_v11, %v263_v13  ;;  %v281_v33 = vsel %vm252_vm1, %v279_v28, 0.0  ;;  %v288_v36 = vsel %vm252_vm1, %v280_v30, 0.0  ;;  %v327_v11 = vld [vmem:[%s913_s19] sm:$0x3] }
  0x63   : > { %v282_v39 = vrot.slane %v281_v33, 4  ;;  %v289_v42 = vrot.slane %v288_v36, 4  ;;  %v336_v8 = vsub.s32 %v333_v4, %v268_v19  ;;  %p649_p2 = pnand %p648_p1, %p642_p4 }
  0x64   : > { %v259_v16 = vmax.f32 %v257_v12, %v258_v14  ;;  %v265_v17 = vrot.slane %v264_v15, 1 }
  0x65   : > { %v283_v45 = vadd.f32 %v282_v39, %v281_v33  ;;  %v290_v48 = vadd.f32 %v289_v42, %v288_v36 }
  0x66   : > { %v266_v18 = vmax.f32 %v264_v15, %v265_v17 }
  0x67   : > { %v284_v51 = vrot.slane %v283_v45, 2  ;;  %v291_v53 = vrot.slane %v290_v48, 2 }
  0x68   : > { %v297_v20 = vcombine.low %v259_v16, %v266_v18 }
  0x69   : > { %v285_v54 = vadd.f32 %v284_v51, %v283_v45  ;;  %v292_v55 = vadd.f32 %v291_v53, %v290_v48 }
  0x6a   : > { %v299_v21 = vsub.f32 %v247_v3, %v297_v20 }
  0x6b   : > { %v286_v56 = vrot.slane %v285_v54, 1  ;;  %v293_v57 = vrot.slane %v292_v55, 1 }
  0x6c   : > { %v300_v23 = vmul.f32 1.442695, %v299_v21 }
  0x6d   : > { %v287_v61 = vadd.f32 %v286_v56, %v285_v54  ;;  %v294_v0 = vadd.f32 %v293_v57, %v292_v55 }
  0x6e   : > { %573 = vpow2.f32 %v300_v23 }
  0x78   : > { %v574_v29 = vpop.eup %573 }
  0x79   : > { %v303_v31 = vcombine.high %v574_v29, %v574_v29  ;;  %v305_v32 = vsel %vm252_vm1, %v574_v29, 0.0 }
  0x7a   : > { %v306_v34 = vrot.slane %v305_v32, 4 }
  0x7b   : > { %v312_v35 = vsel %vm252_vm1, %v303_v31, 0.0 }
  0x7c   : > { %v307_v37 = vadd.f32 %v306_v34, %v305_v32  ;;  %v313_v38 = vrot.slane %v312_v35, 4 }
  0x7e   : > { %v308_v40 = vrot.slane %v307_v37, 2  ;;  %v314_v41 = vadd.f32 %v313_v38, %v312_v35 }
  0x80   : > { %v309_v43 = vadd.f32 %v308_v40, %v307_v37  ;;  %v315_v44 = vrot.slane %v314_v41, 2 }
  0x82   : > { %v310_v46 = vrot.slane %v309_v43, 1  ;;  %v316_v47 = vadd.f32 %v315_v44, %v314_v41 }
  0x84   : > { %v311_v49 = vadd.f32 %v310_v46, %v309_v43  ;;  %v317_v50 = vrot.slane %v316_v47, 1 }
  0x86   : > { %v318_v52 = vadd.f32 %v317_v50, %v316_v47  ;;  %575 = vlog2.f32 %v311_v49 }
  0x88   : > { %577 = vlog2.f32 %v318_v52 }
  0x90   : > { %v576_v60 = vpop.eup %575 }
  0x91   : > { %v320_v62 = vmul.f32 0.6931472, %v576_v60 }
  0x92   : > { %v578_v63 = vpop.eup %577 }
  0x93   : > { %v322_v2 = vmul.f32 0.6931472, %v578_v63  ;;  %v323_v3 = vadd.f32 %v320_v62, %v259_v16 }
  0x95   : > { %v324_v5 = vadd.f32 %v322_v2, %v266_v18  ;;  %v325_v6 = vsub.f32 %v323_v3, %v287_v61 }
  0x97   : > { %v326_v7 = vsub.f32 %v324_v5, %v294_v0 }
  0x99   : > { %v330_v9 = vcombine.low %v325_v6, %v326_v7 }
  0x9b   : > { %v337_v10 = vrot.slane %v330_v9, %v336_v8 }
  0x9d   : > { %v344_v12 = vrot.slane %v337_v10, %v336_v8 }
  0x9f   : > { %v346_v13 = vadd.f32 %v344_v12, %v327_v11 }
  0xa1   : > { %351 = vst.msk [vmem:[%s913_s19] sm:$0x3] %vm909_vm0, %v346_v13 }
  0xa2   : > { %652 = shalt.err (!%p649_p2)
}
  0xa3   : > { %s653_s8 = scalar_lea.hbm %s930_s27, 32  ;;  %s657_s4 = scalar_lea.hbm %s984_s2, 64 }
  0xa4   : > { %p654_p9 = scmp.ne.s32.totalorder %s930_s27, %s653_s8  ;;  %p658_p6 = scmp.lt.u32.totalorder %s930_s27, %s984_s2 }
  0xa5   : > { %p659_p13 = scmp.lt.u32.totalorder %s657_s4, %s653_s8  ;;  %p661_p8 = scmp.lt.u32.totalorder %s653_s8, %s930_s27 }
  0xa6   : > { %p655_p11 = pnand %p654_p9, %p999_p0 }
  0xa7   : > { %p660_p5 = por %p659_p13, %p658_p6 }
  0xa8   : > { %p656_p3 = pneg %p655_p11 }
  0xa9   : > { %p662_p7 = por %p661_p8, %p660_p5 }
  0xab   : > { %p663_p4 = pnand %p662_p7, %p656_p3 }
  0xad   : > { %666 = shalt.err (!%p663_p4)
}
  0xae   : > { %507 = dma.vmem_to_hbm [thread:$0]  (%p999_p0), %s932_s30, 32, %s930_s27, %s353_s28  }
  0xaf PF: > { %s380_s29 = sand.u32 1, %s705_s9   ;;  %p1000_p10 = scmp.ne.s32.totalorder %s990_s24, 0 }
  0xb0   : > { %p1001_p12 = scmp.ge.s32.totalorder %s725_s14, 2  ;;  %s381_s16 = scalar_lea.sflag [#allocation4], %s380_s29 }
  0xb2   : > { %p517_p1 = pnand %p1001_p12, %p1000_p10 }
  0xb4   : > { %700 = dma.done.wait (!%p517_p1), %s381_s16, 32  }
  0xb5   : > { %702 = vsyncadd (!%p517_p1), %s381_s16, 4294967264  ;;  %s21_s14 = sadd.s32 1, %s725_s14   ;;  %s1002_s9 = smov %s709_s10 }
  0xb6   : > { %p18_p2 = scmp.ge.s32.totalorder %s21_s14, 4   ;;  %s1003_s10 = smov %s713_s11 }
  0xb7   : > { %s1004_s11 = smov %s803_s23  ;;  %s1005_s12 = smov %s721_s13 }
  0xb8   : > { %s1006_s13 = smov %s1008_s17  ;;  %20 = sbr.rel (!%p18_p2) target bundleno = 8 (0x8), region = 90 }
  0xbf   :  { %386 = vsyncpa [#allocation3], 1 }
  0xc0   :  { %388 = vsyncpa [#allocation3 + $0x1], 1 }
  0xc1   :  { %389 = vsyncpa [#allocation6], 1 }
  0xc2   :  { %391 = vsyncpa [#allocation6 + $0x1], 1 }
  0xc3   :  { %392 = vsyncpa [#allocation4], 1 }
  0xc4   :  { %394 = vsyncpa [#allocation4 + $0x1], 1 }

</bundles_post_ra>
